<compile_context>
chip_gen: v5e
topology: v5e:2x2
jax: 0.10.0
libtpu: 0.0.40
codegen_flags: <defaults>
</compile_context>

<pallas_src>
import functools

import jax
import jax.numpy as jnp
from jax.experimental import pallas as pl
from jax.experimental.pallas import tpu as pltpu


def _rel_var_kernel(prev_ref, feat_ref, w_abs_ref, b_abs_ref,
                    w_relp_ref, w_relf_ref, b_rel_ref, noise_ref,
                    z_ref, klp_ref, *, cz):
    prev = prev_ref[0]     # (Cp, ts)  channels on sublanes, spatial on lanes
    feat = feat_ref[0]     # (Cf, ts)

    # 1x1 convs == channel matmuls on the MXU: (2*Cz, C) @ (C, ts).
    abs_p = jnp.dot(w_abs_ref[...], prev,
                    preferred_element_type=jnp.float32) + b_abs_ref[...]
    rel_p = (jnp.dot(w_relp_ref[...], prev,
                     preferred_element_type=jnp.float32)
             + jnp.dot(w_relf_ref[...], feat,
                       preferred_element_type=jnp.float32)
             + b_rel_ref[...])

    mean, log_var = abs_p[:cz, :], abs_p[cz:, :]
    d_mean, d_log_var = rel_p[:cz, :], rel_p[cz:, :]

    # Two transcendentals per element; everything else is VPU multiplies.
    half_std = jnp.exp(0.5 * log_var)       # exp(0.5*lv)
    half_dstd = jnp.exp(0.5 * d_log_var)    # exp(0.5*dlv)
    std_total = half_std * half_dstd        # exp(0.5*(lv+dlv))
    var = half_std * half_std               # exp(lv)
    d_var = half_dstd * half_dstd           # exp(dlv)

    # Reparameterized sample with the combined (absolute + relative) params.
    z = (mean + d_mean) + noise_ref[0] * std_total
    z_ref[0] = z.astype(z_ref.dtype)

    # Relative KL partial sum for this tile (mean taken in the wrapper).
    loss = -0.5 * (1.0 + d_log_var - (d_mean * d_mean) / var - d_var)
    partial = jnp.sum(loss)
    klp_ref[...] = jnp.full(klp_ref.shape, partial, dtype=jnp.float32)


def relative_variational_forward(previous, feature,
                                 w_abs, b_abs,
                                 w_rel_prev, w_rel_feat, b_rel,
                                 noise, *, spatial_tile=None):
    """Fused RelativeVariational forward.

    previous:   (B, Cp, H, W) f32
    feature:    (B, Cf, H, W) f32
    w_abs:      (2*Cz, Cp),  b_abs: (2*Cz,)     absolute_parameters (1x1 conv)
    w_rel_prev: (2*Cz, Cp), w_rel_feat: (2*Cz, Cf), b_rel: (2*Cz,)
    noise:      (B, Cz, H, W) f32  standard-normal noise (torch.randn_like)
    Returns (z (B, Cz, H, W), kl scalar).
    """
    B, Cp, H, W = previous.shape
    _, Cf, _, _ = feature.shape
    two_cz = w_abs.shape[0]
    cz = two_cz // 2
    S = H * W

    if spatial_tile is None:
        if S <= 4096:
            spatial_tile = S
        else:
            spatial_tile = next(t for t in range(4096, 0, -128) if S % t == 0)
    ts = spatial_tile
    assert S % ts == 0 and (ts % 128 == 0 or ts == S), \
        "spatial tile must divide H*W and be lane-aligned"
    nt = S // ts

    # NCHW viewed as (B, C, H*W) — free reshapes, no transposes.
    prev_f = previous.reshape(B, Cp, S)
    feat_f = feature.reshape(B, Cf, S)
    noise_f = noise.reshape(B, cz, S)
    b_abs2 = b_abs.reshape(two_cz, 1)
    b_rel2 = b_rel.reshape(two_cz, 1)

    kernel = functools.partial(_rel_var_kernel, cz=cz)

    z_f, kl_parts = pl.pallas_call(
        kernel,
        out_shape=(
            jax.ShapeDtypeStruct((B, cz, S), jnp.float32),
            jax.ShapeDtypeStruct((B, nt, 8, 128), jnp.float32),
        ),
        grid_spec=pltpu.PrefetchScalarGridSpec(
            num_scalar_prefetch=0,
            grid=(B, nt),
            in_specs=[
                pl.BlockSpec((1, Cp, ts), lambda b, s: (b, 0, s)),       # previous
                pl.BlockSpec((1, Cf, ts), lambda b, s: (b, 0, s)),       # feature
                pl.BlockSpec((two_cz, Cp), lambda b, s: (0, 0)),         # w_abs
                pl.BlockSpec((two_cz, 1), lambda b, s: (0, 0)),          # b_abs
                pl.BlockSpec((two_cz, Cp), lambda b, s: (0, 0)),         # w_rel_prev
                pl.BlockSpec((two_cz, Cf), lambda b, s: (0, 0)),         # w_rel_feat
                pl.BlockSpec((two_cz, 1), lambda b, s: (0, 0)),          # b_rel
                pl.BlockSpec((1, cz, ts), lambda b, s: (b, 0, s)),       # noise
            ],
            out_specs=[
                pl.BlockSpec((1, cz, ts), lambda b, s: (b, 0, s)),       # z (NCHW)
                pl.BlockSpec((1, 1, 8, 128), lambda b, s: (b, s, 0, 0)), # kl partials
            ],
        ),
        compiler_params=pltpu.CompilerParams(
            dimension_semantics=("parallel", "parallel")),
    )(prev_f, feat_f, w_abs, b_abs2, w_rel_prev, w_rel_feat, b_rel2, noise_f)

    z = z_f.reshape(B, cz, H, W)
    kl = jnp.sum(kl_parts[:, :, 0, 0]) / float(B * cz * S)
    return z, kl


if __name__ == "__main__":
    B, Cp, Cf, Cz, H, W = 2, 4, 4, 4, 16, 16
    S = H * W

    key = jax.random.PRNGKey(0)
    kp, kf, k1, k2, k3, k4, k5, kn = jax.random.split(key, 8)

    previous = jax.random.normal(kp, (B, Cp, H, W), dtype=jnp.float32)
    feature = jax.random.normal(kf, (B, Cf, H, W), dtype=jnp.float32)

    # Deterministic "parameters" submodules (1x1 convs -> 2*Cz channels).
    w_abs = 0.1 * jax.random.normal(k1, (2 * Cz, Cp), dtype=jnp.float32)
    b_abs = 0.1 * jax.random.normal(k2, (2 * Cz,), dtype=jnp.float32)
    w_rel_prev = 0.1 * jax.random.normal(k3, (2 * Cz, Cp), dtype=jnp.float32)
    w_rel_feat = 0.1 * jax.random.normal(k4, (2 * Cz, Cf), dtype=jnp.float32)
    b_rel = 0.1 * jax.random.normal(k5, (2 * Cz,), dtype=jnp.float32)

    # torch.randn_like noise, generated outside the kernel for determinism.
    noise = jax.random.normal(kn, (B, Cz, H, W), dtype=jnp.float32)

    z, kl = relative_variational_forward(previous, feature,
                                         w_abs, b_abs,
                                         w_rel_prev, w_rel_feat, b_rel,
                                         noise)
    jax.block_until_ready((z, kl))

    # Pure-JAX reference.
    prev_f = previous.reshape(B, Cp, S)
    feat_f = feature.reshape(B, Cf, S)
    abs_p = jnp.einsum('oc,bcs->bos', w_abs, prev_f) + b_abs[None, :, None]
    rel_p = (jnp.einsum('oc,bcs->bos', w_rel_prev, prev_f)
             + jnp.einsum('oc,bcs->bos', w_rel_feat, feat_f)
             + b_rel[None, :, None])
    mean_r, lv_r = abs_p[:, :Cz], abs_p[:, Cz:]
    dmean_r, dlv_r = rel_p[:, :Cz], rel_p[:, Cz:]
    noise_f = noise.reshape(B, Cz, S)
    z_ref = ((mean_r + dmean_r)
             + noise_f * jnp.exp(0.5 * (lv_r + dlv_r))).reshape(B, Cz, H, W)
    var_r = jnp.exp(lv_r)
    dvar_r = jnp.exp(dlv_r)
    kl_ref = jnp.mean(-0.5 * (1.0 + dlv_r - dmean_r ** 2 / var_r - dvar_r))

    assert jnp.allclose(z, z_ref, atol=1e-5, rtol=1e-5), "sample mismatch"
    assert jnp.allclose(kl, kl_ref, atol=1e-5, rtol=1e-5), "kl mismatch"

    print("KERNEL_OK")
</pallas_src>

<mosaic_0001>
module attributes {stable_mosaic.version = 11 : i64} {
  func.func @_rel_var_kernel(%arg0: i32, %arg1: i32, %arg2: memref<1x4x256xf32, #tpu.memory_space<vmem>>, %arg3: memref<1x4x256xf32, #tpu.memory_space<vmem>>, %arg4: memref<8x4xf32, #tpu.memory_space<vmem>>, %arg5: memref<8x1xf32, #tpu.memory_space<vmem>>, %arg6: memref<8x4xf32, #tpu.memory_space<vmem>>, %arg7: memref<8x4xf32, #tpu.memory_space<vmem>>, %arg8: memref<8x1xf32, #tpu.memory_space<vmem>>, %arg9: memref<1x4x256xf32, #tpu.memory_space<vmem>>, %arg10: memref<1x4x256xf32, #tpu.memory_space<vmem>>, %arg11: memref<1x1x8x128xf32, #tpu.memory_space<vmem>>) attributes {dimension_semantics = [#tpu.dimension_semantics<parallel>, #tpu.dimension_semantics<parallel>], iteration_bounds = array<i64: 2, 1>, scalar_prefetch = 0 : i64, scratch_operands = 0 : i64, tpu.core_type = #tpu.core_type<tc>, window_params = [{transform_indices = @transform_0, window_bounds = array<i64: 1, 4, 256>}, {transform_indices = @transform_1, window_bounds = array<i64: 1, 4, 256>}, {pipeline_mode = #tpu.pipeline_mode<synchronous>, transform_indices = @transform_2, window_bounds = array<i64: 8, 4>}, {pipeline_mode = #tpu.pipeline_mode<synchronous>, transform_indices = @transform_3, window_bounds = array<i64: 8, 1>}, {pipeline_mode = #tpu.pipeline_mode<synchronous>, transform_indices = @transform_4, window_bounds = array<i64: 8, 4>}, {pipeline_mode = #tpu.pipeline_mode<synchronous>, transform_indices = @transform_5, window_bounds = array<i64: 8, 4>}, {pipeline_mode = #tpu.pipeline_mode<synchronous>, transform_indices = @transform_6, window_bounds = array<i64: 8, 1>}, {transform_indices = @transform_7, window_bounds = array<i64: 1, 4, 256>}, {transform_indices = @transform_8, window_bounds = array<i64: 1, 4, 256>}, {transform_indices = @transform_9, window_bounds = array<i64: 1, 1, 8, 128>}]} {
    %c0 = arith.constant 0 : index
    %c0_0 = arith.constant 0 : index
    %c0_1 = arith.constant 0 : index
    %0 = vector.load %arg2[%c0, %c0_0, %c0_1] : memref<1x4x256xf32, #tpu.memory_space<vmem>>, vector<1x4x256xf32>
    %1 = vector.shape_cast %0 : vector<1x4x256xf32> to vector<4x256xf32>
    %c0_2 = arith.constant 0 : index
    %c0_3 = arith.constant 0 : index
    %c0_4 = arith.constant 0 : index
    %2 = vector.load %arg3[%c0_2, %c0_3, %c0_4] : memref<1x4x256xf32, #tpu.memory_space<vmem>>, vector<1x4x256xf32>
    %3 = vector.shape_cast %2 : vector<1x4x256xf32> to vector<4x256xf32>
    %c0_5 = arith.constant 0 : index
    %c0_6 = arith.constant 0 : index
    %4 = vector.load %arg4[%c0_5, %c0_6] : memref<8x4xf32, #tpu.memory_space<vmem>>, vector<8x4xf32>
    %cst = arith.constant dense<0.000000e+00> : vector<8x256xf32>
    %5 = tpu.matmul %4, %1, %cst {dimension_numbers = #tpu.dot_dimension_numbers<[1], [0], [0], [1], [0, 0, 1, 1], [], []>} : vector<8x4xf32>, vector<4x256xf32>, vector<8x256xf32> -> vector<8x256xf32>
    %c0_7 = arith.constant 0 : index
    %c0_8 = arith.constant 0 : index
    %6 = vector.load %arg5[%c0_7, %c0_8] : memref<8x1xf32, #tpu.memory_space<vmem>>, vector<8x1xf32>
    %7 = vector.broadcast %6 : vector<8x1xf32> to vector<8x256xf32>
    %8 = arith.addf %5, %7 : vector<8x256xf32>
    %c0_9 = arith.constant 0 : index
    %c0_10 = arith.constant 0 : index
    %9 = vector.load %arg6[%c0_9, %c0_10] : memref<8x4xf32, #tpu.memory_space<vmem>>, vector<8x4xf32>
    %cst_11 = arith.constant dense<0.000000e+00> : vector<8x256xf32>
    %10 = tpu.matmul %9, %1, %cst_11 {dimension_numbers = #tpu.dot_dimension_numbers<[1], [0], [0], [1], [0, 0, 1, 1], [], []>} : vector<8x4xf32>, vector<4x256xf32>, vector<8x256xf32> -> vector<8x256xf32>
    %c0_12 = arith.constant 0 : index
    %c0_13 = arith.constant 0 : index
    %11 = vector.load %arg7[%c0_12, %c0_13] : memref<8x4xf32, #tpu.memory_space<vmem>>, vector<8x4xf32>
    %cst_14 = arith.constant dense<0.000000e+00> : vector<8x256xf32>
    %12 = tpu.matmul %11, %3, %cst_14 {dimension_numbers = #tpu.dot_dimension_numbers<[1], [0], [0], [1], [0, 0, 1, 1], [], []>} : vector<8x4xf32>, vector<4x256xf32>, vector<8x256xf32> -> vector<8x256xf32>
    %13 = arith.addf %10, %12 : vector<8x256xf32>
    %c0_15 = arith.constant 0 : index
    %c0_16 = arith.constant 0 : index
    %14 = vector.load %arg8[%c0_15, %c0_16] : memref<8x1xf32, #tpu.memory_space<vmem>>, vector<8x1xf32>
    %15 = vector.broadcast %14 : vector<8x1xf32> to vector<8x256xf32>
    %16 = arith.addf %13, %15 : vector<8x256xf32>
    %17 = vector.extract_strided_slice %8 {offsets = [0, 0], sizes = [4, 256], strides = [1, 1]} : vector<8x256xf32> to vector<4x256xf32>
    %18 = vector.extract_strided_slice %8 {offsets = [4, 0], sizes = [4, 256], strides = [1, 1]} : vector<8x256xf32> to vector<4x256xf32>
    %19 = vector.extract_strided_slice %16 {offsets = [0, 0], sizes = [4, 256], strides = [1, 1]} : vector<8x256xf32> to vector<4x256xf32>
    %20 = vector.extract_strided_slice %16 {offsets = [4, 0], sizes = [4, 256], strides = [1, 1]} : vector<8x256xf32> to vector<4x256xf32>
    %cst_17 = arith.constant 5.000000e-01 : f32
    %21 = vector.broadcast %cst_17 : f32 to vector<4x256xf32>
    %22 = arith.mulf %21, %18 : vector<4x256xf32>
    %23 = math.exp %22 : vector<4x256xf32>
    %cst_18 = arith.constant 5.000000e-01 : f32
    %24 = vector.broadcast %cst_18 : f32 to vector<4x256xf32>
    %25 = arith.mulf %24, %20 : vector<4x256xf32>
    %26 = math.exp %25 : vector<4x256xf32>
    %27 = arith.mulf %23, %26 : vector<4x256xf32>
    %28 = arith.mulf %23, %23 : vector<4x256xf32>
    %29 = arith.mulf %26, %26 : vector<4x256xf32>
    %30 = arith.addf %17, %19 : vector<4x256xf32>
    %c0_19 = arith.constant 0 : index
    %c0_20 = arith.constant 0 : index
    %c0_21 = arith.constant 0 : index
    %31 = vector.load %arg9[%c0_19, %c0_20, %c0_21] : memref<1x4x256xf32, #tpu.memory_space<vmem>>, vector<1x4x256xf32>
    %32 = vector.shape_cast %31 : vector<1x4x256xf32> to vector<4x256xf32>
    %33 = arith.mulf %32, %27 : vector<4x256xf32>
    %34 = arith.addf %30, %33 : vector<4x256xf32>
    %c0_22 = arith.constant 0 : index
    %c0_23 = arith.constant 0 : index
    %c0_24 = arith.constant 0 : index
    %35 = vector.load %arg10[%c0_22, %c0_23, %c0_24] : memref<1x4x256xf32, #tpu.memory_space<vmem>>, vector<1x4x256xf32>
    %36 = vector.shape_cast %35 : vector<1x4x256xf32> to vector<4x256xf32>
    %37 = vector.shape_cast %34 : vector<4x256xf32> to vector<1x4x256xf32>
    tpu.vector_store %arg10[%c0_22, %c0_23, %c0_24], %37 {strides = array<i32>} : memref<1x4x256xf32, #tpu.memory_space<vmem>>, vector<1x4x256xf32>,
    %cst_25 = arith.constant 1.000000e+00 : f32
    %38 = vector.broadcast %cst_25 : f32 to vector<4x256xf32>
    %39 = arith.addf %38, %20 : vector<4x256xf32>
    %40 = arith.mulf %19, %19 : vector<4x256xf32>
    %41 = arith.divf %40, %28 : vector<4x256xf32>
    %42 = arith.subf %39, %41 : vector<4x256xf32>
    %43 = arith.subf %42, %29 : vector<4x256xf32>
    %cst_26 = arith.constant -5.000000e-01 : f32
    %44 = vector.broadcast %cst_26 : f32 to vector<4x256xf32>
    %45 = arith.mulf %44, %43 : vector<4x256xf32>
    %46 = vector.shape_cast %45 : vector<4x256xf32> to vector<1x4x256xf32>
    %cst_27 = arith.constant dense<0.000000e+00> : vector<1xf32>
    %47 = vector.multi_reduction <add>, %46, %cst_27 [1, 2] : vector<1x4x256xf32> to vector<1xf32>
    %48 = vector.shape_cast %47 : vector<1xf32> to vector<1x1x1xf32>
    %49 = vector.extract %48[0, 0, 0] : f32 from vector<1x1x1xf32>
    %50 = vector.broadcast %49 : f32 to vector<1x1x8x128xf32>
    %c0_28 = arith.constant 0 : index
    %c0_29 = arith.constant 0 : index
    %c0_30 = arith.constant 0 : index
    %c0_31 = arith.constant 0 : index
    %51 = vector.load %arg11[%c0_28, %c0_29, %c0_30, %c0_31] : memref<1x1x8x128xf32, #tpu.memory_space<vmem>>, vector<1x1x8x128xf32>
    tpu.vector_store %arg11[%c0_28, %c0_29, %c0_30, %c0_31], %50 {strides = array<i32>} : memref<1x1x8x128xf32, #tpu.memory_space<vmem>>, vector<1x1x8x128xf32>,
    return
  }
  func.func @transform_0(%arg0: i32, %arg1: i32) -> (i32, i32, i32) {
    %c0_i32 = arith.constant 0 : i32
    %c0_i32_0 = arith.constant 0 : i32
    return %arg0, %c0_i32, %arg1 : i32, i32, i32
  }
  func.func @transform_1(%arg0: i32, %arg1: i32) -> (i32, i32, i32) {
    %c0_i32 = arith.constant 0 : i32
    %c0_i32_0 = arith.constant 0 : i32
    return %arg0, %c0_i32, %arg1 : i32, i32, i32
  }
  func.func @transform_2(%arg0: i32, %arg1: i32) -> (i32, i32) {
    %c0_i32 = arith.constant 0 : i32
    %c0_i32_0 = arith.constant 0 : i32
    %c0_i32_1 = arith.constant 0 : i32
    return %c0_i32, %c0_i32_0 : i32, i32
  }
  func.func @transform_3(%arg0: i32, %arg1: i32) -> (i32, i32) {
    %c0_i32 = arith.constant 0 : i32
    %c0_i32_0 = arith.constant 0 : i32
    %c0_i32_1 = arith.constant 0 : i32
    return %c0_i32, %c0_i32_0 : i32, i32
  }
  func.func @transform_4(%arg0: i32, %arg1: i32) -> (i32, i32) {
    %c0_i32 = arith.constant 0 : i32
    %c0_i32_0 = arith.constant 0 : i32
    %c0_i32_1 = arith.constant 0 : i32
    return %c0_i32, %c0_i32_0 : i32, i32
  }
  func.func @transform_5(%arg0: i32, %arg1: i32) -> (i32, i32) {
    %c0_i32 = arith.constant 0 : i32
    %c0_i32_0 = arith.constant 0 : i32
    %c0_i32_1 = arith.constant 0 : i32
    return %c0_i32, %c0_i32_0 : i32, i32
  }
  func.func @transform_6(%arg0: i32, %arg1: i32) -> (i32, i32) {
    %c0_i32 = arith.constant 0 : i32
    %c0_i32_0 = arith.constant 0 : i32
    %c0_i32_1 = arith.constant 0 : i32
    return %c0_i32, %c0_i32_0 : i32, i32
  }
  func.func @transform_7(%arg0: i32, %arg1: i32) -> (i32, i32, i32) {
    %c0_i32 = arith.constant 0 : i32
    %c0_i32_0 = arith.constant 0 : i32
    return %arg0, %c0_i32, %arg1 : i32, i32, i32
  }
  func.func @transform_8(%arg0: i32, %arg1: i32) -> (i32, i32, i32) {
    %c0_i32 = arith.constant 0 : i32
    %c0_i32_0 = arith.constant 0 : i32
    return %arg0, %c0_i32, %arg1 : i32, i32, i32
  }
  func.func @transform_9(%arg0: i32, %arg1: i32) -> (i32, i32, i32, i32) {
    %c0_i32 = arith.constant 0 : i32
    %c0_i32_0 = arith.constant 0 : i32
    %c0_i32_1 = arith.constant 0 : i32
    return %arg0, %arg1, %c0_i32, %c0_i32_0 : i32, i32, i32, i32
  }
}

</mosaic_0001>

<bundles_post_ra>
// kernel: tpu_custom_call.1
= control target key start
LH: loop header
LB: loop body
LE: loop exit
PB: predicated region body
PF: predicated region fallthrough
CT: control target
= control target key end

     0   :  { %s1457_s0 = inlined_call_operand.vmem [shape: f32[2,4,256], index: 0, kind: input, shape index: {}]   ;;  %s1458_s1 = inlined_call_operand.vmem [shape: f32[2,4,256], index: 1, kind: input, shape index: {}]   ;;  %s1459_s2 = inlined_call_operand.vmem [shape: f32[8,4], index: 2, kind: input, shape index: {}]   ;;  %s1460_s3 = inlined_call_operand.vmem [shape: f32[8,1], index: 3, kind: input, shape index: {}]   ;;  %s1461_s4 = inlined_call_operand.vmem [shape: f32[8,4], index: 4, kind: input, shape index: {}]   ;;  %s1462_s5 = inlined_call_operand.vmem [shape: f32[8,4], index: 5, kind: input, shape index: {}]   ;;  %s1463_s6 = inlined_call_operand.vmem [shape: f32[8,1], index: 6, kind: input, shape index: {}]   ;;  %s1464_s7 = inlined_call_operand.hbm [shape: f32[2,4,256], index: 7, kind: input, shape index: {}]   ;;  %s1465_s8 = inlined_call_operand.hbm [shape: f32[2,4,256], index: 8, kind: output, shape index: {0}]   ;;  %s1466_s9 = inlined_call_operand.hbm [shape: f32[2,1,8,128], index: 9, kind: output, shape index: {1}]  }
   0x1   :  { %1469 = sst [smem:[#allocation13_spill]] %s1457_s0 }
   0x2   :  { %1470 = sst [smem:[#allocation14_spill]] %s1458_s1 }
   0x3   :  { %1471 = sst [smem:[#allocation15_spill]] %s1464_s7 }
   0x4   :  { %15 = vsyncpa [#allocation3], 0 }
   0x5   :  { %17 = vsyncpa [#allocation3 + $0x1], 0 }
   0x6   :  { %18 = vsyncpa [#allocation4], 0 }
   0x7   :  { %20 = vsyncpa [#allocation4 + $0x1], 0 }
   0x8   :  { %21 = vsyncpa [#allocation7], 0 }
   0x9   :  { %23 = vsyncpa [#allocation7 + $0x1], 0  ;;  %s1255_s30 = smov 0   ;;  %s1257_s10 = smov 0  }
   0xa   :  { %s1259_s11 = smov 0   ;;  %s1261_s12 = smov 0  }
   0xb   :  { %s1263_s13 = smov 0   ;;  %s1265_s14 = smov 0  }
   0xc LB: > { %1472 = sst [smem:[#allocation11_spill]] %s1182_s30  ;;  %s937_s15 = sadd.s32 4294967295, %s1202_s14   ;;  %s1202_s14 = sphi %s1265_s14, %s29_s14   ;;  %s1198_s13 = sphi %s1263_s13, %s1488_s13   ;;  %s1194_s12 = sphi %s1261_s12, %s1487_s12   ;;  %s1190_s11 = sphi %s1259_s11, %s1486_s11   ;;  %s1186_s10 = sphi %s1257_s10, %s1485_s10   ;;  %s1182_s30 = sphi %s1255_s30, %s1484_s30  }
   0xd   : > { %s938_s16 = sadd.s32 4294967294, %s1202_s14   ;;  %s41_s17 = sadd.s32 1, %s1198_s13 }
   0xe   : > { %s211_s18 = sadd.s32 1, %s1190_s11  ;;  %p43_p0 = scmp.ge.s32.totalorder %s41_s17, 2 }
   0xf   : > { %p218_p1 = scmp.ne.s32.totalorder %s1190_s11, %s1186_s10  ;;  %p219_p2 = scmp.eq.s32.totalorder %s1202_s14, 0 }
  0x10   : > { %p224_p3 = scmp.ne.s32.totalorder %s1186_s10, %s1182_s30  ;;  %s1490_s17 = smov (%p43_p0, %s41_s17), 0 }
  0x11   : > { %1473 = sst [smem:[#allocation12_spill]] %s1490_s17  ;;  %p1296_p4 = por %p219_p2, %p218_p1 }
  0x12   : > { %p225_p5 = scmp.eq.s32.totalorder %s937_s15, 0  ;;  %s206_s20 = ssub.s32 %s1198_s13, %s1490_s17 }
  0x13   : > { %p250_p6 = scmp.eq.s32.totalorder %s937_s15, 1  ;;  %p209_p7 = scmp.eq.s32.totalorder %s206_s20, 0 }
  0x14   : > { %p1302_p8 = por %p225_p5, %p224_p3  ;;  %p256_p10 = scmp.eq.s32.totalorder %s938_s16, 1 }
  0x15   : > { %p1306_p9 = por %p250_p6, %p218_p1  ;;  %p940_p12 = scmp.ge.s32.totalorder %s1202_s14, 2 }
  0x16   : > { %s1311_s23 = scalar_select %p209_p7, %s1190_s11, %s211_s18  }
  0x17   : > { %p1313_p11 = por %p256_p10, %p224_p3  ;;  %p994_p13 = scmp.lt.s32.totalorder %s1202_s14, 2 }
  0x18   : > { %s345_s25 = sand.u32 1, %s1190_s11   ;;  %s971_s27 = sshll.u32 %s1198_s13, 3 }
  0x19   : > { %s941_s26 = sshll.u32 %s345_s25, 3  ;;  %s1478_s7 = sld [smem:[#allocation15_spill]] }
  0x1a   : > { %s349_s20 = scalar_lea.vmem [#allocation2], %s941_s26  ;;  %p984_p0 = pnand %p994_p13, %p1296_p4 }
  0x1b   : > { %s360_s17 = sshll.u32 %s349_s20, 4  ;;  %p944_p1 = scmp.ge.s32.totalorder %s1202_s14, 1  ;;  %s361_s17 = int_to_ptr.vmem [resolvable:$true] %s360_s17 }
  0x1c   : > { %p365_p2 = scmp.lt.s32.totalorder %s1202_s14, 3  ;;  %s346_s16 = scalar_lea.sflag [#allocation3], %s345_s25 }
  0x1e   : > { %p366_p3 = pnand %p944_p1, %p365_p2 }
  0x1f   : > { %s356_s15 = scalar_lea.hbm %s1478_s7, %s971_s27  ;;  %s1329_s18 = sand.u32 (!%p366_p3), 1, %s1186_s10  }
  0x20   : > { %s358_s30 = sshll.u32 %s356_s15, 4  ;;  %369 = sbr.rel (%p366_p3) target bundleno = 413 (0x19d), region = 52  ;;  %s359_s30 = int_to_ptr.hbm [resolvable:$true] %s358_s30 }
  0x21   : > { %986 = dma.hbm_to_vmem [thread:$0]  (!%p984_p0), %s359_s30, 128, %s361_s17, %s346_s16  }
  0x22   : > { %s1332_s27 = sshll.u32 (!%p366_p3), %s1329_s18, 3  ;;  %s372_s26 = scalar_lea.sflag (!%p366_p3), [#allocation3], %s1329_s18 }
  0x25   : > { %1169 = dma.done.wait (%p1302_p8), %s372_s26, 128  }
  0x26   : > { %1171 = vsyncadd (%p1302_p8), %s372_s26, 4294967168  ;;  %p435_p4 = scmp.lt.s32.totalorder %s1194_s12, 1  ;;  %v1204_v0 = vmov 0   ;;  %s1479_s0 = sld [smem:[#allocation13_spill]]  ;;  %v459_v2 = vld [vmem:[%s1460_s3] sm:$0xff]  ;;  %vm473_vm0 = vcmask 1043456  }
  0x27   : > { %1045 = vset.pattern.permute.xlu0 %v1204_v0  ;;  %s1480_s1 = sld [smem:[#allocation14_spill]]  ;;  %v458_v4 = vld [vmem:[%s1459_s2] sm:$0xff]  ;;  %vm469_vm1 = vcmask 31744   ;;  %s426_s15 = scalar_lea.vmem [#allocation5], %s1332_s27 }
  0x28   : > { %s436_s30 = scalar_select %p435_p4, %s1194_s12, 1  ;;  %462 = vperm.xlu0 %1045, %v459_v2   ;;  %v621_v5 = vld [vmem:[%s1463_s6] sm:$0xff] }
  0x29   : > { %v519_v8 = vld [vmem:[%s1462_s5] sm:$0xff]  ;;  %s974_s20 = sshll.u32 %s1194_s12, 3  ;;  %s1108_s12 = scalar_lea.hbm %s1465_s8, 16 }
  0x2a   : > { %s972_s17 = sshll.u32 %s436_s30, 3  ;;  %v518_v11 = vld [vmem:[%s1461_s4] sm:$0xff]  ;;  %s765_s30 = sshll.u32 %s426_s15, 4  ;;  %s766_s30 = int_to_ptr.vmem [resolvable:$true] %s765_s30 }
  0x2c   : > { %s442_s29 = scalar_lea.vmem %s1479_s0, %s972_s17 }
  0x2d   : > { %v456_v1 = vld [vmem:[%s442_s29] sm:$0xff]  ;;  %s452_s26 = scalar_lea.vmem %s1480_s1, %s972_s17  ;;  %s1481_s29 = scalar_lea.vmem [#allocation2], %s1332_s27 }
  0x2e   : > { %466 = vst [vmem:[#allocation1] ss:$2 sm:$0xff] %v456_v1  ;;  %v457_v3 = vld [vmem:[%s452_s26] sm:$0xff]  ;;  %s763_s26 = scalar_lea.hbm %s1465_s8, %s974_s20  ;;  %s745_s17 = scalar_lea.sflag [#allocation4], %s1329_s18 }
  0x2f   : > { %s767_s19 = sshll.u32 %s763_s26, 4  ;;  %s768_s19 = int_to_ptr.hbm [resolvable:$true] %s767_s19 }
  0x30   : > { %624 = vperm.xlu0 %1045, %v621_v5   ;;  %s1102_s7 = sshra.s32 %s768_s19, 4  ;;  %s1103_s7 = int_to_ptr.hbm [resolvable:$true] %s1102_s7 }
  0x31   : > { %s1104_s28 = scalar_lea.hbm %s1103_s7, 8  ;;  %p1109_p8 = scmp.lt.s32.totalorder %s1103_s7, %s1465_s8 }
  0x32   : > { %p1105_p5 = scmp.ne.s32.totalorder %s1103_s7, %s1104_s28  ;;  %p1110_p10 = scmp.lt.s32.totalorder %s1108_s12, %s1104_s28 }
  0x34   : > { %p1106_p6 = pnand %p1105_p5, %p1306_p9  ;;  %p1111_p13 = por %p1110_p10, %p1109_p8 }
  0x35   : > { %v467_v6 = vld.sshfl [vmem:[#allocation1] sm:$0xff pattern:$0x75316420]  ;;  %v468_v7 = vld.sshfl [vmem:[#allocation1 + $0x8] sm:$0xff pattern:$0x75316420] }
  0x36   : > { %952 = vmatpush.msk.msra.mxu0 %vm473_vm0, %v467_v6  ;;  %954 = vmatpush.msk.msra.mxu1 %vm473_vm0, %v468_v7  ;;  %521 = vst [vmem:[#allocation1] ss:$2 sm:$0xff] %v457_v3  ;;  %p1107_p7 = pneg %p1106_p6 }
  0x37   : > { %953 = vmatmul.msk.f32.vlgmr.msra.gmra.mxu0 %vm469_vm1, %v458_v4  ;;  %955 = vmatmul.msk.f32.vlgmr.msra.gmra.mxu1 %vm469_vm1, %v458_v4 }
  0x38   : > { %p1112_p0 = pnand %p1111_p13, %p1107_p7 }
  0x3d   : > { %v522_v9 = vld.sshfl [vmem:[#allocation1] sm:$0xff pattern:$0x75316420]  ;;  %v523_v10 = vld.sshfl [vmem:[#allocation1 + $0x8] sm:$0xff pattern:$0x75316420] }
  0x3e   : > { %956 = vmatpush.msk.msra.mxu2 %vm473_vm0, %v522_v9  ;;  %958 = vmatpush.msk.msra.mxu3 %vm473_vm0, %v523_v10  ;;  %571 = vst [vmem:[#allocation1] ss:$2 sm:$0xff] %v456_v1 }
  0x3f   : > { %957 = vmatmul.msk.f32.vlgmr.msra.gmra.mxu2 %vm469_vm1, %v519_v8  ;;  %959 = vmatmul.msk.f32.vlgmr.msra.gmra.mxu3 %vm469_vm1, %v519_v8 }
  0x45   : > { %v572_v12 = vld.sshfl [vmem:[#allocation1] sm:$0xff pattern:$0x75316420]  ;;  %v573_v13 = vld.sshfl [vmem:[#allocation1 + $0x8] sm:$0xff pattern:$0x75316420] }
  0x46   : > { %960 = vmatpush.msk.msrb.mxu0 %vm473_vm0, %v572_v12  ;;  %962 = vmatpush.msk.msrb.mxu1 %vm473_vm0, %v573_v13  ;;  %v649_v12 = vld [vmem:[%s1481_s29] sm:$0xff] }
  0x47   : > { %961 = vmatmul.msk.f32.vlgmr.msrb.gmra.mxu0 %vm469_vm1, %v518_v11  ;;  %963 = vmatmul.msk.f32.vlgmr.msrb.gmra.mxu1 %vm469_vm1, %v518_v11 }
  0x9a   : > { %v463_v14 = vpop.permute.xlu0 %462 }
  0xa2   : > { %v625_v35 = vpop.permute.xlu0 %624 }
  0xb4   : > { %v495_v15 = vpop.f32.mrf.mxu0  ;;  %v515_v16 = vpop.f32.mrf.mxu1 }
  0xb5   : > { %v1375_v17 = vadd.f32 %v495_v15, %v463_v14  ;;  %v1377_v18 = vadd.f32 %v515_v16, %v463_v14 }
  0xb7   : > { %v629_v19 = vmul.f32 0.5, %v1375_v17  ;;  %v630_v20 = vmul.f32 0.5, %v1377_v18 }
  0xb9   : > { %v631_v21 = vmul.f32 1.442695, %v629_v19  ;;  %v633_v22 = vmul.f32 1.442695, %v630_v20 }
  0xbb   : > { %1046 = vpow2.f32 %v631_v21 }
  0xbc   : > { %1048 = vpow2.f32 %v633_v22 }
  0xc1   : > { %v1047_v23 = vpop.eup %1046 }
  0xc2   : > { %v1049_v24 = vpop.eup %1048  ;;  %v643_v25 = vmul.f32 %v1047_v23, %v1047_v23  ;;  %v548_v26 = vpop.f32.mrf.mxu2 }
  0xc3   : > { %v568_v27 = vpop.f32.mrf.mxu3  ;;  %v644_v28 = vmul.f32 %v1049_v24, %v1049_v24 }
  0xc4   : > { %v678_v29 = vrot.slane %v643_v25, 4  ;;  %v598_v30 = vpop.f32.mrf.mxu0  ;;  %v618_v31 = vpop.f32.mrf.mxu1 }
  0xc5   : > { %v679_v32 = vrot.slane %v644_v28, 4  ;;  %v599_v33 = vadd.f32 %v598_v30, %v548_v26  ;;  %v619_v34 = vadd.f32 %v618_v31, %v568_v27 }
  0xc6   : > { %1050 = vrcp.f32 %v678_v29  ;;  %v691_v47 = vand.u32 2147483647, %v678_v29  ;;  %v693_v48 = vand.u32 2147483648, %v678_v29  ;;  %vm687_vm4 = vweird.f32 %v678_v29 }
  0xc7   : > { %1052 = vrcp.f32 %v679_v32  ;;  %v1381_v36 = vadd.f32 %v625_v35, %v599_v33  ;;  %v1383_v37 = vadd.f32 %v625_v35, %v619_v34  ;;  %v708_v51 = vand.u32 2147483648, %v679_v32 }
  0xc8   : > { %v706_v53 = vand.u32 2147483647, %v679_v32  ;;  %vm702_vm5 = vweird.f32 %v679_v32  ;;  %vm692_vm7 = vcmp.eq.f32.partialorder %v691_v47, 8.507059e+37  ;;  %v694_v58 = vor.u32 1.1754944e-38, %v693_v48 }
  0xc9   : > { %v635_v38 = vmul.f32 0.5, %v1381_v36  ;;  %v636_v39 = vmul.f32 0.5, %v1383_v37  ;;  %v674_v61 = vmul.f32 %v1381_v36, %v1381_v36  ;;  %v709_v63 = vor.u32 1.1754944e-38, %v708_v51 }
  0xca   : > { %v675_v0 = vmul.f32 %v1383_v37, %v1383_v37  ;;  %vm707_vm9 = vcmp.eq.f32.partialorder %v706_v53, 8.507059e+37  ;;  %v672_v6 = vadd.f32 1.0, %v1381_v36  ;;  %v673_v8 = vadd.f32 1.0, %v1383_v37 }
  0xcb   : > { %v637_v40 = vmul.f32 1.442695, %v635_v38  ;;  %v639_v41 = vmul.f32 1.442695, %v636_v39  ;;  %v648_v28 = vadd.f32 %v1383_v37, %v1377_v18  ;;  %v647_v31 = vadd.f32 %v1381_v36, %v1375_v17 }
  0xcc   : > { %v1051_v42 = vpop.eup %1050 }
  0xcd   : > { %v1053_v43 = vpop.eup %1052  ;;  %1054 = vpow2.f32 %v637_v40  ;;  %v683_v44 = vmul.f32 %v1051_v42, %v678_v29  ;;  %vm688_vm2 = vweird.f32 %v1051_v42 }
  0xce   : > { %1056 = vpow2.f32 %v639_v41  ;;  %v698_v45 = vmul.f32 %v1053_v43, %v679_v32  ;;  %vm703_vm3 = vweird.f32 %v1053_v43  ;;  %vm689_vm6 = vmor %vm687_vm4, %vm688_vm2 }
  0xcf   : > { %v684_v46 = vsub.f32 1.0, %v683_v44  ;;  %vm704_vm8 = vmor %vm702_vm5, %vm703_vm3 }
  0xd0   : > { %v699_v49 = vsub.f32 1.0, %v698_v45 }
  0xd1   : > { %v685_v50 = vmul.f32 %v1051_v42, %v684_v46 }
  0xd2   : > { %v700_v52 = vmul.f32 %v1053_v43, %v699_v49 }
  0xd3   : > { %v1055_v54 = vpop.eup %1054  ;;  %v686_v55 = vadd.f32 %v1051_v42, %v685_v50 }
  0xd4   : > { %v1057_v56 = vpop.eup %1056  ;;  %v641_v57 = vmul.f32 %v1055_v54, %v1047_v23  ;;  %v701_v59 = vadd.f32 %v1053_v43, %v700_v52  ;;  %v645_v10 = vmul.f32 %v1055_v54, %v1055_v54 }
  0xd5   : > { %v642_v60 = vmul.f32 %v1057_v56, %v1049_v24  ;;  %v690_v62 = vsel %vm689_vm6, %v1051_v42, %v686_v55  ;;  %v646_v13 = vmul.f32 %v1057_v56, %v1057_v56 }
  0xd6   : > { %652 = vst.sshfl [vmem:[#allocation1] sm:$0xff pattern:$0x75316420] %v641_v57  ;;  %v695_v1 = vsel %vm692_vm7, %v694_v58, %v690_v62  ;;  %v705_v2 = vsel %vm704_vm8, %v1053_v43, %v701_v59 }
  0xd7   : > { %653 = vst.sshfl [vmem:[#allocation1 + $0x8] sm:$0xff pattern:$0x75316420] %v642_v60  ;;  %v696_v3 = vmul.f32 %v695_v1, %v674_v61  ;;  %v710_v4 = vsel %vm707_vm9, %v709_v63, %v705_v2 }
  0xd8   : > { %v711_v5 = vmul.f32 %v710_v4, %v675_v0 }
  0xd9   : > { %v714_v7 = vrot.slane %v696_v3, 4 }
  0xda   : > { %v715_v9 = vrot.slane %v711_v5, 4 }
  0xdb   : > { %v718_v11 = vsub.f32 %v672_v6, %v714_v7 }
  0xdc   : > { %v719_v14 = vsub.f32 %v673_v8, %v715_v9 }
  0xdd   : > { %v720_v15 = vsub.f32 %v718_v11, %v645_v10 }
  0xde   : > { %v655_v16 = vld [vmem:[#allocation1 + $0x1] ss:$2 sm:$0xff]  ;;  %v721_v19 = vsub.f32 %v719_v14, %v646_v13 }
  0xdf   : > { %v657_v20 = vmul.f32 %v655_v16, %v649_v12  ;;  %v722_v21 = vmul.f32 -0.5, %v720_v15 }
  0xe0   : > { %v723_v22 = vmul.f32 -0.5, %v721_v19 }
  0xe1   : > { %659 = vst [vmem:[#allocation1] ss:$2 sm:$0xff] %v657_v20  ;;  %v726_v23 = vrot.slane %v722_v21, 4 }
  0xe2   : > { %v727_v24 = vrot.slane %v723_v22, 4 }
  0xe3   : > { %v730_v25 = vsel %vm473_vm0, %v726_v23, 0.0 }
  0xe4   : > { %v731_v26 = vsel %vm473_vm0, %v727_v24, 0.0 }
  0xe5   : > { %v732_v27 = vadd.f32 %v731_v26, %v730_v25 }
  0xe7   : > { %733 = vadd.xlane.f32.xlu1 %v732_v27 }
  0xe8   : > { %v661_v29 = vld.sshfl [vmem:[#allocation1 + $0x8] sm:$0xff pattern:$0x75316420]  ;;  %v660_v30 = vld.sshfl [vmem:[#allocation1] sm:$0xff pattern:$0x75316420] }
  0xe9   : > { %v665_v32 = vadd.f32 %v661_v29, %v648_v28  ;;  %v664_v33 = vadd.f32 %v660_v30, %v647_v31 }
  0xeb   : > { %v668_v34 = vrot.slane %v665_v32, 4 }
  0xed   : > { %v669_v35 = vsel %vm473_vm0, %v664_v33, %v668_v34 }
  0xee   : > { %671 = vst [vmem:[%s426_s15] sm:$0xff] %v669_v35 }
  0xef   : > { %1115 = shalt.err (!%p1112_p0)
}
  0xf0   : > { %979 = dma.vmem_to_hbm [thread:$0]  (%p1306_p9), %s766_s30, 128, %s768_s19, %s745_s17  }
  0xf1   : > { %s778_s15 = scalar_lea.hbm %s1466_s9, %s974_s20  ;;  %s433_s21 = scalar_lea.vmem [#allocation6], %s1332_s27 }
  0xf2   : > { %s780_s16 = sshll.u32 %s433_s21, 4  ;;  %s782_s26 = sshll.u32 %s778_s15, 4  ;;  %s781_s16 = int_to_ptr.vmem [resolvable:$true] %s780_s16  ;;  %s783_s26 = int_to_ptr.hbm [resolvable:$true] %s782_s26 }
  0xf3   : > { %s750_s30 = scalar_lea.sflag [#allocation7], %s1329_s18  ;;  %s1130_s19 = sshra.s32 %s783_s26, 4  ;;  %s1131_s19 = int_to_ptr.hbm [resolvable:$true] %s1130_s19 }
  0xf4   : > { %s1132_s17 = scalar_lea.hbm %s1131_s19, 8  ;;  %s1136_s20 = scalar_lea.hbm %s1466_s9, 16 }
  0xf5   : > { %p1133_p1 = scmp.ne.s32.totalorder %s1131_s19, %s1132_s17  ;;  %p1137_p4 = scmp.lt.s32.totalorder %s1131_s19, %s1466_s9 }
  0xf6   : > { %p1138_p5 = scmp.lt.s32.totalorder %s1136_s20, %s1132_s17 }
  0xf7   : > { %p1134_p2 = pnand %p1133_p1, %p1306_p9 }
  0xf8   : > { %p1139_p6 = por %p1138_p5, %p1137_p4 }
  0xf9   : > { %p1135_p3 = pneg %p1134_p2 }
  0xfb   : > { %p1140_p7 = pnand %p1139_p6, %p1135_p3 }
 0x15a   : > { %v734_v17 = vpop.xlane.xlu1 %733 }
 0x15b   : > { %v735_v18 = vrot.slane %v734_v17, 4 }
 0x15d   : > { %v736_v36 = vadd.f32 %v735_v18, %v734_v17 }
 0x15f   : > { %v737_v37 = vrot.slane %v736_v36, 2 }
 0x161   : > { %v738_v38 = vadd.f32 %v737_v37, %v736_v36 }
 0x163   : > { %v739_v39 = vrot.slane %v738_v38, 1 }
 0x165   : > { %v740_v40 = vadd.f32 %v739_v39, %v738_v38 }
 0x167   : > { %975 = vpush %v740_v40 }
 0x198   : > { %s976_s7 = spop %975 }
 0x199   : > { %v742_v41 = vstv %s976_s7 }
 0x19a   : > { %743 = vst [vmem:[%s433_s21] sm:$0xff] %v742_v41 }
 0x19b   : > { %1143 = shalt.err (!%p1140_p7)
}
 0x19c   : > { %980 = dma.vmem_to_hbm [thread:$0]  (%p1306_p9), %s781_s16, 128, %s783_s26, %s750_s30  }
 0x19d PF: > { %s1482_s18 = sld [smem:[#allocation11_spill]]  ;;  %p988_p8 = pnand %p940_p12, %p1313_p11 }
 0x19f   : > { %p989_p10 = pneg %p988_p8 }
 0x1a3   : > { %s794_s12 = sand.u32 1, %s1482_s18  }
 0x1a4   : > { %s795_s0 = scalar_lea.sflag [#allocation4], %s794_s12 }
 0x1a5   : > { %1173 = dma.done.wait (%p989_p10), %s795_s0, 128  }
 0x1a6   : > { %1175 = vsyncadd (%p989_p10), %s795_s0, 4294967168  ;;  %s805_s1 = scalar_lea.sflag [#allocation7], %s794_s12 }
 0x1a7   : > { %1177 = dma.done.wait (%p989_p10), %s805_s1, 128  }
 0x1a8   : > { %1179 = vsyncadd (%p989_p10), %s805_s1, 4294967168  ;;  %s29_s14 = sadd.s32 1, %s1202_s14   ;;  %s1483_s22 = sld [smem:[#allocation12_spill]] }
 0x1a9   : > { %p26_p13 = scmp.ge.s32.totalorder %s29_s14, 4   ;;  %s1484_s30 = smov %s1186_s10 }
 0x1aa   : > { %s1485_s10 = smov %s1190_s11  ;;  %s1486_s11 = smov %s1311_s23 }
 0x1ab   : > { %s1487_s12 = smov %s1198_s13  ;;  %28 = sbr.rel (!%p26_p13) target bundleno = 12 (0xc), region = 121 }
 0x1ae   : > { %s1488_s13 = smov %s1483_s22 }
 0x1b0   :  { %811 = vsyncpa [#allocation3], 1 }
 0x1b1   :  { %813 = vsyncpa [#allocation3 + $0x1], 1 }
 0x1b2   :  { %814 = vsyncpa [#allocation4], 1 }
 0x1b3   :  { %816 = vsyncpa [#allocation4 + $0x1], 1 }
 0x1b4   :  { %817 = vsyncpa [#allocation7], 1 }
 0x1b5   :  { %819 = vsyncpa [#allocation7 + $0x1], 1 }

</bundles_post_ra>
